<compile_context>
chip_gen: v6e
topology: v6e:2x2x1
jax: 0.10.0
libtpu: 0.0.40
codegen_flags: <defaults>
</compile_context>

<pallas_src>
import jax
import jax.numpy as jnp
from jax.experimental import pallas as pl
from jax.experimental.pallas import tpu as pltpu


# ---------------- model hyper-parameters (small, consistent with __init__) ----
CONV_FEATURES = 4     # conv_features
CONV_WIDTH    = 3     # conv_width
LR_FEATURES   = 6     # lr_features
CONV_HIDDEN   = 32    # conv_hidden
MLP_LAYERS    = 3     # mlp_layers
BATCH         = 2
SEQ           = 8

MLP_D = CONV_HIDDEN + LR_FEATURES          # 38 = true MLP width

# ---------------- packed-slab layout (every block starts on an 8-row boundary)
_SLAB_COLS = 128                           # lane-dense slab width
_TAP_ROWS  = 8                             # each conv tap gets its own 8-row band
_HP = CONV_HIDDEN                          # 32
_FP = 8                                    # lr features padded 6 -> 8
_DP = 40                                   # MLP width padded 38 -> 40
_R_CONV = 0                                # rows   0..23 : conv taps (3 x (4x32) valid)
_R_W1T  = _R_CONV + CONV_WIDTH * _TAP_ROWS # rows  24..55 : wd @ w1[:H]   (32x38 valid)
_R_W1B  = _R_W1T + _HP                     # rows  56..63 : w1[H:]        ( 6x38 valid)
_R_W2   = _R_W1B + _FP                     # rows  64..103: w2            (38x38 valid)
_R_W3   = _R_W2 + _DP                      # rows 104..143: w3            (38x 6 valid)
_R_BIAS = _R_W3 + _DP                      # rows 144..151: bconv, b1', b2, b3
_SLAB_ROWS = _R_BIAS + 8                   # 152


# ------------------------------ Pallas kernel --------------------------------
def _lrconv_kernel(x_ref, lr_ref, w_ref, out_ref):
    """Whole forward in one invocation (im2col, crop, MLP, residual fused).

    x_ref   : (B, S, Fc)        raw conv-branch input
    lr_ref  : (B, S, Flr)       raw lr-branch input
    w_ref   : (152, 128) f32    packed weights + biases (see _R_* offsets)
    out_ref : (B, s_out, Flr)   lr_crop + mlp(cat(conv(x), lr_crop))
    """
    f32 = jnp.float32
    B, S, _ = x_ref.shape
    Flr = lr_ref.shape[-1]
    W = CONV_WIDTH
    H = CONV_HIDDEN
    s_out = S - W + 1

    # ---- static, sublane-aligned views of the packed slab (hoisted) ----
    w_taps = [w_ref[_R_CONV + k * _TAP_ROWS:_R_CONV + k * _TAP_ROWS + CONV_FEATURES, 0:H]
              for k in range(W)]                              # W x (Fc, 32)
    w1_top = w_ref[_R_W1T:_R_W1T + H, 0:_DP]                  # (32, 40)
    w1_bot = w_ref[_R_W1B:_R_W1B + Flr, 0:_DP]                # ( 6, 40)
    w2     = w_ref[_R_W2:_R_W2 + _DP, 0:_DP]                  # (40, 40) rows 38/39 zero
    w3     = w_ref[_R_W3:_R_W3 + _DP, 0:Flr]                  # (40,  6) rows 38/39 zero
    b_conv = w_ref[_R_BIAS + 0:_R_BIAS + 1, 0:H]              # (1, 32)
    b_1    = w_ref[_R_BIAS + 1:_R_BIAS + 2, 0:_DP]            # (1, 40) cols 38/39 zero
    b_2    = w_ref[_R_BIAS + 2:_R_BIAS + 3, 0:_DP]            # (1, 40)
    b_3    = w_ref[_R_BIAS + 3:_R_BIAS + 4, 0:Flr]            # (1,  6)

    # Static unroll over the (tiny) batch: everything stays 2-D for robust
    # Mosaic lowering; 10 sub-40-wide dots are noise next to call overhead.
    for b in range(B):
        xb  = x_ref[b]                                        # (S, Fc)
        lrb = lr_ref[b][W - 1:, :]                            # (s_out, Flr) time-crop

        # --- conv branch: im2col folded into W accumulating tap dots + ReLU
        acc = jnp.dot(xb[0:s_out, :], w_taps[0], preferred_element_type=f32)
        for k in range(1, W):
            acc += jnp.dot(xb[k:k + s_out, :], w_taps[k], preferred_element_type=f32)
        h = jnp.maximum(acc + b_conv, 0.0)                    # (s_out, 32)

        # --- MLP layer 1 (wd/bd folded); split dot avoids a lane concat ---
        z = (jnp.dot(h,   w1_top, preferred_element_type=f32)
             + jnp.dot(lrb, w1_bot, preferred_element_type=f32)
             + b_1)
        z = jnp.maximum(z, 0.0)                               # (s_out, 40) cols 38/39 = 0

        # --- MLP layer 2 ---
        z = jnp.maximum(jnp.dot(z, w2, preferred_element_type=f32) + b_2, 0.0)

        # --- MLP output layer + residual ---
        z = jnp.dot(z, w3, preferred_element_type=f32) + b_3  # (s_out, Flr)
        out_ref[b] = (lrb + z).astype(out_ref.dtype)


# ------------------------------ weight packing --------------------------------
def pack_params(params):
    """One-time transform: fold wd/bd into layer 1, pack weights+biases into
    a single lane-dense (152, 128) f32 slab (all blocks 8-row aligned)."""
    wconv, bconv, wd, bd, w1, b1, w2, b2, w3, b3 = params
    W, Fc, H = wconv.shape
    D = w1.shape[0]
    Flr = w3.shape[1]

    def pad2(a, rows):
        return jnp.pad(a, ((0, rows - a.shape[0]), (0, _SLAB_COLS - a.shape[1])))

    w1_top = wd @ w1[:H, :]                 # fold wd Linear (no ReLU between)
    b1_eff = bd @ w1[:H, :] + b1
    w1_bot = w1[H:, :]

    pieces = [pad2(wconv[k], _TAP_ROWS) for k in range(W)]       # rows 0..23
    pieces += [pad2(w1_top, _HP),                                # rows 24..55
               pad2(w1_bot, _FP),                                # rows 56..63
               pad2(w2, _DP),                                    # rows 64..103
               pad2(w3, _DP)]                                    # rows 104..143

    bias_rows = jnp.zeros((8, _SLAB_COLS), jnp.float32)          # rows 144..151
    bias_rows = bias_rows.at[0, :H].set(bconv[0])
    bias_rows = bias_rows.at[1, :D].set(b1_eff[0])
    bias_rows = bias_rows.at[2, :D].set(b2[0])
    bias_rows = bias_rows.at[3, :Flr].set(b3[0])
    pieces.append(bias_rows)

    w_slab = jnp.concatenate(pieces, axis=0).astype(jnp.float32)
    assert w_slab.shape == (_SLAB_ROWS, _SLAB_COLS)
    return w_slab


# ------------------------------ wrapper ---------------------------------------
@jax.jit
def lr_conv_old_forward(x, lr, w_slab):
    B, S, Fc = x.shape
    Flr = lr.shape[-1]
    s_out = S - CONV_WIDTH + 1
    D = MLP_D

    flops = 2 * B * s_out * (CONV_WIDTH * Fc * CONV_HIDDEN      # conv taps
                             + CONV_HIDDEN * D + Flr * D        # layer 1 (split)
                             + D * D                            # layer 2
                             + D * Flr)                         # output layer
    bytes_accessed = 4 * (x.size + lr.size + w_slab.size + B * s_out * Flr)

    # Single gridless invocation: whole problem (~80 KiB) is VMEM-resident.
    # Scale-up note (v7x): once B*s_out reaches the hundreds, add a leading
    # M-tile grid axis with dimension_semantics=("parallel",) and bf16 dots.
    return pl.pallas_call(
        _lrconv_kernel,
        out_shape=jax.ShapeDtypeStruct((B, s_out, Flr), x.dtype),
        in_specs=[pl.BlockSpec(memory_space=pltpu.MemorySpace.VMEM),
                  pl.BlockSpec(memory_space=pltpu.MemorySpace.VMEM),
                  pl.BlockSpec(memory_space=pltpu.MemorySpace.VMEM)],
        out_specs=pl.BlockSpec(memory_space=pltpu.MemorySpace.VMEM),
        compiler_params=pltpu.CompilerParams(vmem_limit_bytes=16 * 1024 * 1024),
        cost_estimate=pl.CostEstimate(flops=flops, transcendentals=0,
                                      bytes_accessed=bytes_accessed),
    )(x, lr, w_slab)


# ------------------------------ reference (pure JAX, un-fused) ----------------
def lr_conv_old_reference(x, lr, params):
    wconv, bconv, wd, bd, w1, b1, w2, b2, w3, b3 = params
    W, H = CONV_WIDTH, CONV_HIDDEN
    S = x.shape[1]
    s_out = S - W + 1
    acc = jnp.zeros((x.shape[0], s_out, H), jnp.float32)
    for k in range(W):
        acc = acc + jnp.einsum("bsf,fh->bsh", x[:, k:k + s_out, :], wconv[k])
    h = jnp.maximum(acc + bconv, 0.0)
    h = jnp.einsum("bsh,ho->bso", h, wd) + bd
    lr_crop = lr[:, W - 1:, :]
    cat = jnp.concatenate([h, lr_crop], axis=2)
    z = jnp.maximum(jnp.einsum("bsd,de->bse", cat, w1) + b1, 0.0)
    z = jnp.maximum(jnp.einsum("bsd,de->bse", z, w2) + b2, 0.0)
    z = jnp.einsum("bsd,de->bse", z, w3) + b3
    return lr_crop + z


# ------------------------------ parameter init --------------------------------
def init_params(key):
    W, Fc, H, Flr = CONV_WIDTH, CONV_FEATURES, CONV_HIDDEN, LR_FEATURES
    D = H + Flr
    ks = jax.random.split(key, 10)

    def uni(k, shape, fan_in):
        bound = 1.0 / jnp.sqrt(fan_in)
        return jax.random.uniform(k, shape, jnp.float32, -bound, bound)

    wconv = uni(ks[0], (W, Fc, H), Fc * W)      # Conv1d weight, tap-major
    bconv = uni(ks[1], (1, H), Fc * W)
    wd    = uni(ks[2], (H, H), H)               # Linear(hidden -> out_features=hidden)
    bd    = uni(ks[3], (1, H), H)
    w1    = uni(ks[4], (D, D), D)               # mlp layer 1
    b1    = uni(ks[5], (1, D), D)
    w2    = uni(ks[6], (D, D), D)               # mlp layer 2
    b2    = uni(ks[7], (1, D), D)
    w3    = uni(ks[8], (D, Flr), D)             # mlp output layer
    b3    = uni(ks[9], (1, Flr), D)
    return (wconv, bconv, wd, bd, w1, b1, w2, b2, w3, b3)


# ------------------------------------ main -------------------------------------
if __name__ == "__main__":
    key = jax.random.PRNGKey(0)
    kx, klr, kp = jax.random.split(key, 3)

    x  = jax.random.normal(kx,  (BATCH, SEQ, CONV_FEATURES), jnp.float32)
    lr = jax.random.normal(klr, (BATCH, SEQ, LR_FEATURES),  jnp.float32)
    params = init_params(kp)
    w_slab = pack_params(params)

    out = lr_conv_old_forward(x, lr, w_slab)
    out = jax.block_until_ready(out)

    ref = lr_conv_old_reference(x, lr, params)
    assert out.shape == (BATCH, SEQ - CONV_WIDTH + 1, LR_FEATURES)
    assert jnp.allclose(out, ref, atol=1e-4, rtol=1e-4), "mismatch vs pure-JAX reference"

    print("KERNEL_OK")
</pallas_src>

<mosaic_0001>
module attributes {stable_mosaic.version = 11 : i64} {
  func.func @_lrconv_kernel(%arg0: memref<2x8x4xf32, #tpu.memory_space<vmem>>, %arg1: memref<2x8x6xf32, #tpu.memory_space<vmem>>, %arg2: memref<152x128xf32, #tpu.memory_space<vmem>>, %arg3: memref<2x6x6xf32, #tpu.memory_space<vmem>>) attributes {dimension_semantics = [], scalar_prefetch = 0 : i64, scratch_operands = 0 : i64, tpu.core_type = #tpu.core_type<tc>} {
    %c0 = arith.constant 0 : index
    %c0_0 = arith.constant 0 : index
    %0 = vector.load %arg2[%c0, %c0_0] : memref<152x128xf32, #tpu.memory_space<vmem>>, vector<4x32xf32>
    %c8 = arith.constant 8 : index
    %c0_1 = arith.constant 0 : index
    %1 = vector.load %arg2[%c8, %c0_1] : memref<152x128xf32, #tpu.memory_space<vmem>>, vector<4x32xf32>
    %c16 = arith.constant 16 : index
    %c0_2 = arith.constant 0 : index
    %2 = vector.load %arg2[%c16, %c0_2] : memref<152x128xf32, #tpu.memory_space<vmem>>, vector<4x32xf32>
    %c24 = arith.constant 24 : index
    %c0_3 = arith.constant 0 : index
    %3 = vector.load %arg2[%c24, %c0_3] : memref<152x128xf32, #tpu.memory_space<vmem>>, vector<32x40xf32>
    %c56 = arith.constant 56 : index
    %c0_4 = arith.constant 0 : index
    %4 = vector.load %arg2[%c56, %c0_4] : memref<152x128xf32, #tpu.memory_space<vmem>>, vector<6x40xf32>
    %c64 = arith.constant 64 : index
    %c0_5 = arith.constant 0 : index
    %5 = vector.load %arg2[%c64, %c0_5] : memref<152x128xf32, #tpu.memory_space<vmem>>, vector<40x40xf32>
    %c104 = arith.constant 104 : index
    %c0_6 = arith.constant 0 : index
    %6 = vector.load %arg2[%c104, %c0_6] : memref<152x128xf32, #tpu.memory_space<vmem>>, vector<40x6xf32>
    %c144 = arith.constant 144 : index
    %c0_7 = arith.constant 0 : index
    %7 = vector.load %arg2[%c144, %c0_7] : memref<152x128xf32, #tpu.memory_space<vmem>>, vector<1x32xf32>
    %c145 = arith.constant 145 : index
    %c0_8 = arith.constant 0 : index
    %8 = vector.load %arg2[%c145, %c0_8] : memref<152x128xf32, #tpu.memory_space<vmem>>, vector<1x40xf32>
    %c146 = arith.constant 146 : index
    %c0_9 = arith.constant 0 : index
    %9 = vector.load %arg2[%c146, %c0_9] : memref<152x128xf32, #tpu.memory_space<vmem>>, vector<1x40xf32>
    %c147 = arith.constant 147 : index
    %c0_10 = arith.constant 0 : index
    %10 = vector.load %arg2[%c147, %c0_10] : memref<152x128xf32, #tpu.memory_space<vmem>>, vector<1x6xf32>
    %c0_11 = arith.constant 0 : index
    %c0_12 = arith.constant 0 : index
    %c0_13 = arith.constant 0 : index
    %11 = vector.load %arg0[%c0_11, %c0_12, %c0_13] : memref<2x8x4xf32, #tpu.memory_space<vmem>>, vector<1x8x4xf32>
    %12 = vector.shape_cast %11 : vector<1x8x4xf32> to vector<8x4xf32>
    %c0_14 = arith.constant 0 : index
    %c0_15 = arith.constant 0 : index
    %c0_16 = arith.constant 0 : index
    %13 = vector.load %arg1[%c0_14, %c0_15, %c0_16] : memref<2x8x6xf32, #tpu.memory_space<vmem>>, vector<1x8x6xf32>
    %14 = vector.shape_cast %13 : vector<1x8x6xf32> to vector<8x6xf32>
    %15 = vector.extract_strided_slice %14 {offsets = [2, 0], sizes = [6, 6], strides = [1, 1]} : vector<8x6xf32> to vector<6x6xf32>
    %16 = vector.extract_strided_slice %12 {offsets = [0, 0], sizes = [6, 4], strides = [1, 1]} : vector<8x4xf32> to vector<6x4xf32>
    %cst = arith.constant dense<0.000000e+00> : vector<6x32xf32>
    %17 = tpu.matmul %16, %0, %cst {dimension_numbers = #tpu.dot_dimension_numbers<[1], [0], [0], [1], [0, 0, 1, 1], [], []>} : vector<6x4xf32>, vector<4x32xf32>, vector<6x32xf32> -> vector<6x32xf32>
    %18 = vector.extract_strided_slice %12 {offsets = [1, 0], sizes = [6, 4], strides = [1, 1]} : vector<8x4xf32> to vector<6x4xf32>
    %cst_17 = arith.constant dense<0.000000e+00> : vector<6x32xf32>
    %19 = tpu.matmul %18, %1, %cst_17 {dimension_numbers = #tpu.dot_dimension_numbers<[1], [0], [0], [1], [0, 0, 1, 1], [], []>} : vector<6x4xf32>, vector<4x32xf32>, vector<6x32xf32> -> vector<6x32xf32>
    %20 = arith.addf %17, %19 : vector<6x32xf32>
    %21 = vector.extract_strided_slice %12 {offsets = [2, 0], sizes = [6, 4], strides = [1, 1]} : vector<8x4xf32> to vector<6x4xf32>
    %cst_18 = arith.constant dense<0.000000e+00> : vector<6x32xf32>
    %22 = tpu.matmul %21, %2, %cst_18 {dimension_numbers = #tpu.dot_dimension_numbers<[1], [0], [0], [1], [0, 0, 1, 1], [], []>} : vector<6x4xf32>, vector<4x32xf32>, vector<6x32xf32> -> vector<6x32xf32>
    %23 = arith.addf %20, %22 : vector<6x32xf32>
    %24 = vector.broadcast %7 : vector<1x32xf32> to vector<6x32xf32>
    %25 = arith.addf %23, %24 : vector<6x32xf32>
    %cst_19 = arith.constant 0.000000e+00 : f32
    %26 = vector.broadcast %cst_19 : f32 to vector<6x32xf32>
    %27 = arith.maximumf %25, %26 : vector<6x32xf32>
    %cst_20 = arith.constant dense<0.000000e+00> : vector<6x40xf32>
    %28 = tpu.matmul %27, %3, %cst_20 {dimension_numbers = #tpu.dot_dimension_numbers<[1], [0], [0], [1], [0, 0, 1, 1], [], []>} : vector<6x32xf32>, vector<32x40xf32>, vector<6x40xf32> -> vector<6x40xf32>
    %cst_21 = arith.constant dense<0.000000e+00> : vector<6x40xf32>
    %29 = tpu.matmul %15, %4, %cst_21 {dimension_numbers = #tpu.dot_dimension_numbers<[1], [0], [0], [1], [0, 0, 1, 1], [], []>} : vector<6x6xf32>, vector<6x40xf32>, vector<6x40xf32> -> vector<6x40xf32>
    %30 = arith.addf %28, %29 : vector<6x40xf32>
    %31 = vector.broadcast %8 : vector<1x40xf32> to vector<6x40xf32>
    %32 = arith.addf %30, %31 : vector<6x40xf32>
    %cst_22 = arith.constant 0.000000e+00 : f32
    %33 = vector.broadcast %cst_22 : f32 to vector<6x40xf32>
    %34 = arith.maximumf %32, %33 : vector<6x40xf32>
    %cst_23 = arith.constant dense<0.000000e+00> : vector<6x40xf32>
    %35 = tpu.matmul %34, %5, %cst_23 {dimension_numbers = #tpu.dot_dimension_numbers<[1], [0], [0], [1], [0, 0, 1, 1], [], []>} : vector<6x40xf32>, vector<40x40xf32>, vector<6x40xf32> -> vector<6x40xf32>
    %36 = vector.broadcast %9 : vector<1x40xf32> to vector<6x40xf32>
    %37 = arith.addf %35, %36 : vector<6x40xf32>
    %cst_24 = arith.constant 0.000000e+00 : f32
    %38 = vector.broadcast %cst_24 : f32 to vector<6x40xf32>
    %39 = arith.maximumf %37, %38 : vector<6x40xf32>
    %cst_25 = arith.constant dense<0.000000e+00> : vector<6x6xf32>
    %40 = tpu.matmul %39, %6, %cst_25 {dimension_numbers = #tpu.dot_dimension_numbers<[1], [0], [0], [1], [0, 0, 1, 1], [], []>} : vector<6x40xf32>, vector<40x6xf32>, vector<6x6xf32> -> vector<6x6xf32>
    %41 = vector.broadcast %10 : vector<1x6xf32> to vector<6x6xf32>
    %42 = arith.addf %40, %41 : vector<6x6xf32>
    %43 = arith.addf %15, %42 : vector<6x6xf32>
    %c0_26 = arith.constant 0 : index
    %c0_27 = arith.constant 0 : index
    %c0_28 = arith.constant 0 : index
    %44 = vector.load %arg3[%c0_26, %c0_27, %c0_28] : memref<2x6x6xf32, #tpu.memory_space<vmem>>, vector<1x6x6xf32>
    %45 = vector.shape_cast %44 : vector<1x6x6xf32> to vector<6x6xf32>
    %46 = vector.shape_cast %43 : vector<6x6xf32> to vector<1x6x6xf32>
    tpu.vector_store %arg3[%c0_26, %c0_27, %c0_28], %46 {strides = array<i32>} : memref<2x6x6xf32, #tpu.memory_space<vmem>>, vector<1x6x6xf32>,
    %c1 = arith.constant 1 : index
    %c0_29 = arith.constant 0 : index
    %c0_30 = arith.constant 0 : index
    %47 = vector.load %arg0[%c1, %c0_29, %c0_30] : memref<2x8x4xf32, #tpu.memory_space<vmem>>, vector<1x8x4xf32>
    %48 = vector.shape_cast %47 : vector<1x8x4xf32> to vector<8x4xf32>
    %c1_31 = arith.constant 1 : index
    %c0_32 = arith.constant 0 : index
    %c0_33 = arith.constant 0 : index
    %49 = vector.load %arg1[%c1_31, %c0_32, %c0_33] : memref<2x8x6xf32, #tpu.memory_space<vmem>>, vector<1x8x6xf32>
    %50 = vector.shape_cast %49 : vector<1x8x6xf32> to vector<8x6xf32>
    %51 = vector.extract_strided_slice %50 {offsets = [2, 0], sizes = [6, 6], strides = [1, 1]} : vector<8x6xf32> to vector<6x6xf32>
    %52 = vector.extract_strided_slice %48 {offsets = [0, 0], sizes = [6, 4], strides = [1, 1]} : vector<8x4xf32> to vector<6x4xf32>
    %cst_34 = arith.constant dense<0.000000e+00> : vector<6x32xf32>
    %53 = tpu.matmul %52, %0, %cst_34 {dimension_numbers = #tpu.dot_dimension_numbers<[1], [0], [0], [1], [0, 0, 1, 1], [], []>} : vector<6x4xf32>, vector<4x32xf32>, vector<6x32xf32> -> vector<6x32xf32>
    %54 = vector.extract_strided_slice %48 {offsets = [1, 0], sizes = [6, 4], strides = [1, 1]} : vector<8x4xf32> to vector<6x4xf32>
    %cst_35 = arith.constant dense<0.000000e+00> : vector<6x32xf32>
    %55 = tpu.matmul %54, %1, %cst_35 {dimension_numbers = #tpu.dot_dimension_numbers<[1], [0], [0], [1], [0, 0, 1, 1], [], []>} : vector<6x4xf32>, vector<4x32xf32>, vector<6x32xf32> -> vector<6x32xf32>
    %56 = arith.addf %53, %55 : vector<6x32xf32>
    %57 = vector.extract_strided_slice %48 {offsets = [2, 0], sizes = [6, 4], strides = [1, 1]} : vector<8x4xf32> to vector<6x4xf32>
    %cst_36 = arith.constant dense<0.000000e+00> : vector<6x32xf32>
    %58 = tpu.matmul %57, %2, %cst_36 {dimension_numbers = #tpu.dot_dimension_numbers<[1], [0], [0], [1], [0, 0, 1, 1], [], []>} : vector<6x4xf32>, vector<4x32xf32>, vector<6x32xf32> -> vector<6x32xf32>
    %59 = arith.addf %56, %58 : vector<6x32xf32>
    %60 = vector.broadcast %7 : vector<1x32xf32> to vector<6x32xf32>
    %61 = arith.addf %59, %60 : vector<6x32xf32>
    %cst_37 = arith.constant 0.000000e+00 : f32
    %62 = vector.broadcast %cst_37 : f32 to vector<6x32xf32>
    %63 = arith.maximumf %61, %62 : vector<6x32xf32>
    %cst_38 = arith.constant dense<0.000000e+00> : vector<6x40xf32>
    %64 = tpu.matmul %63, %3, %cst_38 {dimension_numbers = #tpu.dot_dimension_numbers<[1], [0], [0], [1], [0, 0, 1, 1], [], []>} : vector<6x32xf32>, vector<32x40xf32>, vector<6x40xf32> -> vector<6x40xf32>
    %cst_39 = arith.constant dense<0.000000e+00> : vector<6x40xf32>
    %65 = tpu.matmul %51, %4, %cst_39 {dimension_numbers = #tpu.dot_dimension_numbers<[1], [0], [0], [1], [0, 0, 1, 1], [], []>} : vector<6x6xf32>, vector<6x40xf32>, vector<6x40xf32> -> vector<6x40xf32>
    %66 = arith.addf %64, %65 : vector<6x40xf32>
    %67 = vector.broadcast %8 : vector<1x40xf32> to vector<6x40xf32>
    %68 = arith.addf %66, %67 : vector<6x40xf32>
    %cst_40 = arith.constant 0.000000e+00 : f32
    %69 = vector.broadcast %cst_40 : f32 to vector<6x40xf32>
    %70 = arith.maximumf %68, %69 : vector<6x40xf32>
    %cst_41 = arith.constant dense<0.000000e+00> : vector<6x40xf32>
    %71 = tpu.matmul %70, %5, %cst_41 {dimension_numbers = #tpu.dot_dimension_numbers<[1], [0], [0], [1], [0, 0, 1, 1], [], []>} : vector<6x40xf32>, vector<40x40xf32>, vector<6x40xf32> -> vector<6x40xf32>
    %72 = vector.broadcast %9 : vector<1x40xf32> to vector<6x40xf32>
    %73 = arith.addf %71, %72 : vector<6x40xf32>
    %cst_42 = arith.constant 0.000000e+00 : f32
    %74 = vector.broadcast %cst_42 : f32 to vector<6x40xf32>
    %75 = arith.maximumf %73, %74 : vector<6x40xf32>
    %cst_43 = arith.constant dense<0.000000e+00> : vector<6x6xf32>
    %76 = tpu.matmul %75, %6, %cst_43 {dimension_numbers = #tpu.dot_dimension_numbers<[1], [0], [0], [1], [0, 0, 1, 1], [], []>} : vector<6x40xf32>, vector<40x6xf32>, vector<6x6xf32> -> vector<6x6xf32>
    %77 = vector.broadcast %10 : vector<1x6xf32> to vector<6x6xf32>
    %78 = arith.addf %76, %77 : vector<6x6xf32>
    %79 = arith.addf %51, %78 : vector<6x6xf32>
    %c1_44 = arith.constant 1 : index
    %c0_45 = arith.constant 0 : index
    %c0_46 = arith.constant 0 : index
    %80 = vector.load %arg3[%c1_44, %c0_45, %c0_46] : memref<2x6x6xf32, #tpu.memory_space<vmem>>, vector<1x6x6xf32>
    %81 = vector.shape_cast %80 : vector<1x6x6xf32> to vector<6x6xf32>
    %82 = vector.shape_cast %79 : vector<6x6xf32> to vector<1x6x6xf32>
    tpu.vector_store %arg3[%c1_44, %c0_45, %c0_46], %82 {strides = array<i32>} : memref<2x6x6xf32, #tpu.memory_space<vmem>>, vector<1x6x6xf32>,
    return
  }
}

</mosaic_0001>

<bundles_post_ra>
// kernel: lr_conv_old_forward.1
= control target key start
LH: loop header
LB: loop body
LE: loop exit
PB: predicated region body
PF: predicated region fallthrough
CT: control target
= control target key end

     0   :  { %8 = vsyncpa [#allocation3], 0  ;;  %s1363_s12 = smov [#allocation2]   ;;  %s1585_s0 = inlined_call_operand.vmem [shape: f32[2,8,4], index: 0, kind: input, shape index: {}]   ;;  %s1586_s1 = inlined_call_operand.vmem [shape: f32[2,8,6], index: 1, kind: input, shape index: {}]   ;;  %s1587_s2 = inlined_call_operand.hbm [shape: f32[152,128], index: 2, kind: input, shape index: {}]   ;;  %s1588_s3 = inlined_call_operand.vmem [shape: f32[2,6,6], index: 3, kind: output, shape index: {}]  }
   0x1   :  { %s18_s13 = sshll.u32 %s1363_s12, 4  ;;  %s19_s13 = int_to_ptr.vmem [resolvable:$true] %s18_s13 }
   0x2   :  { %s1349_s14 = scalar_lea.vmem %s19_s13, 2432  ;;  %p1354_p1 = scmp.lt.s32.totalorder %s19_s13, %s19_s13 }
   0x3   :  { %p1350_p0 = scmp.ne.s32.totalorder %s19_s13, %s1349_s14  ;;  %p1355_p2 = scmp.lt.s32.totalorder %s1349_s14, %s1349_s14 }
   0x5   :  { %p1356_p3 = por %p1355_p2, %p1354_p1 }
   0x7   :  { %p1357_p4 = pnand %p1356_p3, %p1350_p0 }
   0x9   :  { %1360 = shalt.err (!%p1357_p4)
}
   0xa   :  { %s1364_s15 = smov 128   ;;  %s1365_s16 = smov 8  }
   0xb   :  { %24 = dma.hbm_to_vmem [thread:$0]  %s1587_s2, 2432, %s19_s13, [#allocation3], %s1364_s15, %s1364_s15, %s1365_s16  }
   0xc   :  { %1361 = dma.done.wait [#allocation3], 2432  }
   0xd   :  { %1362 = vsyncadd [#allocation3], 4294964864  ;;  %v1366_v0 = vmov 0.0   ;;  %vm1367_vm0 = vmmov 0   ;;  %vm57_vm1 = vcmask 1043456   ;;  %v50_v2 = vld [vmem:[%s1585_s0] sm:$0xff] }
   0xe   :  { %1222 = vmatprep.subr.mxu1 %v1366_v0  ;;  %1224 = vmatprep.mubr.msk.f32.mxu1 %vm1367_vm0, %v1366_v0  ;;  %v1397_v1 = vld [vmem:[#allocation2 + $0x8] sm:$0xf]  ;;  %vm54_vm2 = vcmask 31744   ;;  %v53_v3 = vrot.slane %v50_v2, 1  ;;  %v1404_v4 = vld [vmem:[#allocation2] sm:$0xf] }
   0xf   :  { %1232 = vmatprep.subr.mxu0 %v1366_v0  ;;  %1234 = vmatprep.mubr.msk.f32.mxu0 %vm1367_vm0, %v1366_v0  ;;  %v1406_v5 = vld [vmem:[#allocation2 + $0x10] sm:$0xf]  ;;  %v206_v6 = vrot.slane %v50_v2, 2  ;;  %v1428_v8 = vld [vmem:[#allocation2 + $0x28] sm:$0xff]  ;;  %v1434_v9 = vld [vmem:[%s1586_s1] sm:$0xff]  ;;  %vm294_vm3 = vcmask 1045504  }
  0x10   :  { %1223 = vmatpush3.msk.msra.mxu1 %vm57_vm1, %v1397_v1  ;;  %1233 = vmatpush3.msk.msra.mxu0 %vm57_vm1, %v1406_v5  ;;  %v1424_v7 = vld [vmem:[#allocation2 + $0x30] sm:$0xff]  ;;  %v1436_v10 = vld [vmem:[#allocation2 + $0x38] sm:$0x3f]  ;;  %v1439_v11 = vld [vmem:[#allocation2 + $0x20] sm:$0xff]  ;;  %v290_v12 = vrot.slane %v1434_v9, 2  ;;  %vm291_vm4 = vcmask 48128  }
  0x11   :  { %1227 = vmatprep.subr.mxu1 %v1366_v0  ;;  %1225 = vmatmul.mubr.msk.f32.vlgmr.msra.gmra.mxu1 %vm54_vm2, %v53_v3  ;;  %v1447_v13 = vld [vmem:[#allocation2 + $0x18] sm:$0xff]  ;;  %v1454_v14 = vld [vmem:[#allocation2 + $0x60] sm:$0xff]  ;;  %v1458_v21 = vld [vmem:[#allocation2 + $0x90] ss:$0 sm:$0xff]  ;;  %vm368_vm5 = vcmask 261120   ;;  %vm452_vm6 = vcmask 326656  }
  0x12   :  { %1235 = vmatmul.mubr.msk.f32.vlgmr.msra.gmra.mxu0 %vm54_vm2, %v206_v6  ;;  %1228 = vmatpush3.msk.msra.mxu1 %vm57_vm1, %v1404_v4  ;;  %v1464_v27 = vld [vmem:[#allocation2 + $0x58] sm:$0xff]  ;;  %v1468_v29 = vld [vmem:[#allocation2 + $0x50] sm:$0xff]  ;;  %v1472_v30 = vld [vmem:[#allocation2 + $0x48] sm:$0xff]  ;;  %vm608_vm7 = vcmask 48130  }
  0x13   :  { %1229 = vmatprep.mubr.msk.f32.mxu1 %vm1367_vm0, %v1366_v0  ;;  %1242 = vmatprep.subr.mxu0 %v1366_v0  ;;  %v1476_v31 = vld [vmem:[#allocation2 + $0x40] sm:$0xff]  ;;  %v1479_v32 = vld [vmem:[#allocation2 + $0x88] sm:$0xff]  ;;  %v1486_v34 = vld [vmem:[#allocation2 + $0x78] sm:$0xff] }
  0x14   :  { %1237 = vmatprep.subr.mxu1 %v1366_v0  ;;  %1250 = vmatprep.mubr.msk.f32.mxu0 %vm1367_vm0, %v1366_v0  ;;  %v1481_v33 = vld [vmem:[#allocation2 + $0x80] sm:$0xff]  ;;  %v1492_v35 = vld [vmem:[#allocation2 + $0x91] ss:$0 sm:$0xff]  ;;  %v1158_v40 = vld [vmem:[%s1585_s0 + $0x8] sm:$0xff] }
  0x15   :  { %1230 = vmatmul.mubr.msk.f32.vlgmr.msra.gmra.mxu1 %vm54_vm2, %v50_v2  ;;  %1243 = vmatpush3.msra.mxu0 %v1424_v7  ;;  %v615_v42 = vrot.slane %v1158_v40, 1  ;;  %v1516_v43 = vld [vmem:[#allocation2 + $0x70] sm:$0xff]  ;;  %v1520_v44 = vld [vmem:[#allocation2 + $0x68] sm:$0xff]  ;;  %v760_v51 = vrot.slane %v1158_v40, 2 }
  0x16   :  { %1239 = vmatprep.mubr.msk.f32.mxu1 %vm1367_vm0, %v1366_v0  ;;  %1244 = vmatprep.subr.mxu0 %v1366_v0  ;;  %v1524_v45 = vld [vmem:[#allocation2 + $0x92] ss:$0 sm:$0xff]  ;;  %v1159_v56 = vld [vmem:[%s1586_s1 + $0x8] sm:$0xff]  ;;  %v1156_v58 = vld [vmem:[#allocation2 + $0x93] ss:$0 sm:$0xff] }
  0x17   :  { %1245 = vmatpush3.msra.mxu0 %v1428_v8  ;;  %1238 = vmatpush3.msk.msra.mxu1 %vm294_vm3, %v1436_v10  ;;  %v837_v57 = vrot.slane %v1159_v56, 2 }
  0x18   :  { %1246 = vmatprep.subr.mxu0 %v1366_v0  ;;  %1253 = vmatprep.subr.mxu1 %v1366_v0 }
  0x19   :  { %1247 = vmatpush3.msra.mxu0 %v1439_v11  ;;  %1240 = vmatmul.mubr.msk.f32.vlgmr.msra.gmra.mxu1 %vm291_vm4, %v290_v12 }
  0x1a   :  { %1248 = vmatprep.subr.mxu0 %v1366_v0  ;;  %1263 = vmatprep.mubr.msk.f32.mxu1 %vm1367_vm0, %v1366_v0 }
  0x1b   :  { %1249 = vmatpush3.msra.mxu0 %v1447_v13  ;;  %1254 = vmatpush3.msra.mxu1 %v1454_v14 }
  0x1c   :  { %1266 = vmatprep.subr.mxu0 %v1366_v0  ;;  %1255 = vmatprep.subr.mxu1 %v1366_v0 }
  0x1d   :  { %1256 = vmatpush3.msra.mxu1 %v1464_v27 }
  0x1e   :  { %1257 = vmatprep.subr.mxu1 %v1366_v0 }
  0x1f   :  { %1258 = vmatpush3.msra.mxu1 %v1468_v29 }
  0x20   :  { %1259 = vmatprep.subr.mxu1 %v1366_v0 }
  0x21   :  { %1260 = vmatpush3.msra.mxu1 %v1472_v30 }
  0x22   :  { %1261 = vmatprep.subr.mxu1 %v1366_v0 }
  0x23   :  { %1262 = vmatpush3.msra.mxu1 %v1476_v31 }
  0x24   :  { %1279 = vmatprep.subr.mxu1 %v1366_v0 }
  0xd1   :  { %v127_v15 = vpop.f32.mrf.mxu1 }
  0xd2   :  { %v278_v16 = vpop.f32.mrf.mxu0 }
  0xd3   :  { %v1226_v17 = vpop.f32.mrf.mxu1 }
  0xd4   :  { %v1236_v18 = vpop.f32.mrf.mxu0 }
  0xd5   :  { %v202_v19 = vpop.f32.mrf.mxu1 }
  0xd6   :  { %v203_v20 = vadd.f32 %v202_v19, %v127_v15 }
  0xd7   :  { %v1231_v22 = vpop.f32.mrf.mxu1 }
  0xd8   :  { %v282_v23 = vadd.f32 %v278_v16, %v203_v20 }
  0xd9   :  { %v364_v26 = vpop.f32.mrf.mxu1 }
  0xda   :  { %v287_v24 = vadd.f32 %v1458_v21, %v282_v23 }
  0xdb   :  { %v1241_v28 = vpop.f32.mrf.mxu1 }
  0xdc   :  { %v288_v25 = vmax.f32 %v287_v24, 0.0 }
  0xde   :  { %1251 = vmatmul.mubr.msk.f32.vlgmr.msra.gmra.mxu0 %vm368_vm5, %v288_v25 }
  0xdf   :  { %1276 = vmatprep.mubr.msk.f32.mxu0 %vm1367_vm0, %v1366_v0  ;;  %1267 = vmatpush3.msra.mxu0 %v1479_v32 }
  0xe0   :  { %1268 = vmatprep.subr.mxu0 %v1366_v0 }
  0xe1   :  { %1269 = vmatpush3.msra.mxu0 %v1481_v33 }
  0xe2   :  { %1270 = vmatprep.subr.mxu0 %v1366_v0 }
  0xe3   :  { %1271 = vmatpush3.msra.mxu0 %v1486_v34 }
  0xe4   :  { %1272 = vmatprep.subr.mxu0 %v1366_v0 }
  0xe5   :  { %1273 = vmatpush3.msra.mxu0 %v1516_v43 }
  0xe6   :  { %1274 = vmatprep.subr.mxu0 %v1366_v0 }
  0xe7   :  { %1275 = vmatpush3.msra.mxu0 %v1520_v44 }
  0xe8   :  { %1289 = vmatprep.subr.mxu0 %v1366_v0 }
 0x19e   :  { %v438_v36 = vpop.f32.mrf.mxu0 }
 0x19f   :  { %v439_v37 = vadd.f32 %v438_v36, %v364_v26 }
 0x1a0   :  { %v1252_v38 = vpop.f32.mrf.mxu0 }
 0x1a1   :  { %v446_v39 = vadd.f32 %v1492_v35, %v439_v37 }
 0x1a3   :  { %v447_v41 = vmax.f32 %v446_v39, 0.0 }
 0x1a5   :  { %1264 = vmatmul.mubr.msk.f32.vlgmr.msra.gmra.mxu1 %vm452_vm6, %v447_v41 }
 0x1a6   :  { %1280 = vmatpush3.msk.msra.mxu1 %vm57_vm1, %v1397_v1  ;;  %1281 = vmatprep.mubr.msk.f32.mxu1 %vm1367_vm0, %v1366_v0 }
 0x1a7   :  { %1284 = vmatprep.subr.mxu1 %v1366_v0 }
 0x1a9   :  { %1282 = vmatmul.mubr.msk.f32.vlgmr.msra.gmra.mxu1 %vm54_vm2, %v615_v42 }
 0x1aa   :  { %1285 = vmatpush3.msk.msra.mxu1 %vm57_vm1, %v1404_v4  ;;  %1286 = vmatprep.mubr.msk.f32.mxu1 %vm1367_vm0, %v1366_v0 }
 0x1ab   :  { %1294 = vmatprep.subr.mxu1 %v1366_v0 }
 0x1ad   :  { %1287 = vmatmul.mubr.msk.f32.vlgmr.msra.gmra.mxu1 %vm54_vm2, %v1158_v40 }
 0x1ae   :  { %1295 = vmatpush3.msk.msra.mxu1 %vm294_vm3, %v1436_v10  ;;  %1296 = vmatprep.mubr.msk.f32.mxu1 %vm1367_vm0, %v1366_v0 }
 0x1af   :  { %1310 = vmatprep.subr.mxu1 %v1366_v0 }
 0x1b1   :  { %1297 = vmatmul.mubr.msk.f32.vlgmr.msra.gmra.mxu1 %vm291_vm4, %v837_v57 }
 0x1b2   :  { %1311 = vmatpush3.msra.mxu1 %v1454_v14  ;;  %1320 = vmatprep.mubr.msk.f32.mxu1 %vm1367_vm0, %v1366_v0 }
 0x1b3   :  { %1312 = vmatprep.subr.mxu1 %v1366_v0 }
 0x1b4   :  { %1313 = vmatpush3.msra.mxu1 %v1464_v27 }
 0x1b5   :  { %1314 = vmatprep.subr.mxu1 %v1366_v0 }
 0x1b6   :  { %1315 = vmatpush3.msra.mxu1 %v1468_v29 }
 0x1b7   :  { %1316 = vmatprep.subr.mxu1 %v1366_v0 }
 0x1b8   :  { %1317 = vmatpush3.msra.mxu1 %v1472_v30 }
 0x1b9   :  { %1318 = vmatprep.subr.mxu1 %v1366_v0 }
 0x1ba   :  { %1319 = vmatpush3.msra.mxu1 %v1476_v31 }
 0x265   :  { %v522_v46 = vpop.f32.mrf.mxu1 }
 0x266   :  { %v523_v47 = vadd.f32 %v1524_v45, %v522_v46 }
 0x267   :  { %v1265_v48 = vpop.f32.mrf.mxu1 }
 0x268   :  { %v526_v49 = vmax.f32 %v523_v47, 0.0 }
 0x269   :  { %v684_v50 = vpop.f32.mrf.mxu1 }
 0x26a   :  { %1277 = vmatmul.mubr.msk.f32.vlgmr.msra.gmra.mxu0 %vm452_vm6, %v526_v49 }
 0x26b   :  { %1290 = vmatpush3.msk.msra.mxu0 %vm57_vm1, %v1406_v5  ;;  %1291 = vmatprep.mubr.msk.f32.mxu0 %vm1367_vm0, %v1366_v0  ;;  %v1283_v52 = vpop.f32.mrf.mxu1 }
 0x26c   :  { %1299 = vmatprep.subr.mxu0 %v1366_v0 }
 0x26d   :  { %v756_v53 = vpop.f32.mrf.mxu1 }
 0x26e   :  { %1292 = vmatmul.mubr.msk.f32.vlgmr.msra.gmra.mxu0 %vm54_vm2, %v760_v51  ;;  %v757_v54 = vadd.f32 %v756_v53, %v684_v50 }
 0x26f   :  { %v1288_v55 = vpop.f32.mrf.mxu1  ;;  %1300 = vmatpush3.msra.mxu0 %v1424_v7  ;;  %1307 = vmatprep.mubr.msk.f32.mxu0 %vm1367_vm0, %v1366_v0 }
 0x270   :  { %1301 = vmatprep.subr.mxu0 %v1366_v0 }
 0x271   :  { %1302 = vmatpush3.msra.mxu0 %v1428_v8  ;;  %v906_v6 = vpop.f32.mrf.mxu1 }
 0x272   :  { %1303 = vmatprep.subr.mxu0 %v1366_v0 }
 0x273   :  { %1304 = vmatpush3.msra.mxu0 %v1439_v11  ;;  %v1298_v7 = vpop.f32.mrf.mxu1 }
 0x274   :  { %1305 = vmatprep.subr.mxu0 %v1366_v0 }
 0x275   :  { %1306 = vmatpush3.msra.mxu0 %v1447_v13 }
 0x276   :  { %1323 = vmatprep.subr.mxu0 %v1366_v0 }
 0x32a   :  { %v600_v59 = vpop.f32.mrf.mxu0 }
 0x32b   :  { %v601_v60 = vadd.f32 %v1156_v58, %v600_v59 }
 0x32c   :  { %v1278_v61 = vpop.f32.mrf.mxu0 }
 0x32d   :  { %v605_v62 = vrot.slane %v601_v60, 6 }
 0x32e   :  { %v829_v63 = vpop.f32.mrf.mxu0 }
 0x32f   :  { %v607_v1 = vadd.f32 %v605_v62, %v1434_v9  ;;  %v833_v2 = vadd.f32 %v829_v63, %v757_v54 }
 0x330   :  { %v1293_v3 = vpop.f32.mrf.mxu0 }
 0x331   :  { %609 = vst.msk [vmem:[%s1588_s3 - $0x2] sm:$0xfc] %vm608_vm7, %v607_v1  ;;  %v834_v4 = vadd.f32 %v1458_v21, %v833_v2 }
 0x333   :  { %v835_v5 = vmax.f32 %v834_v4, 0.0 }
 0x335   :  { %1308 = vmatmul.mubr.msk.f32.vlgmr.msra.gmra.mxu0 %vm368_vm5, %v835_v5 }
 0x336   :  { %1324 = vmatpush3.msra.mxu0 %v1479_v32  ;;  %1333 = vmatprep.mubr.msk.f32.mxu0 %vm1367_vm0, %v1366_v0 }
 0x337   :  { %1325 = vmatprep.subr.mxu0 %v1366_v0 }
 0x338   :  { %1326 = vmatpush3.msra.mxu0 %v1481_v33 }
 0x339   :  { %1327 = vmatprep.subr.mxu0 %v1366_v0 }
 0x33a   :  { %1328 = vmatpush3.msra.mxu0 %v1486_v34 }
 0x33b   :  { %1329 = vmatprep.subr.mxu0 %v1366_v0 }
 0x33c   :  { %1330 = vmatpush3.msra.mxu0 %v1516_v43 }
 0x33d   :  { %1331 = vmatprep.subr.mxu0 %v1366_v0 }
 0x33e   :  { %1332 = vmatpush3.msra.mxu0 %v1520_v44 }
 0x3f5   :  { %v979_v8 = vpop.f32.mrf.mxu0 }
 0x3f6   :  { %v980_v9 = vadd.f32 %v979_v8, %v906_v6 }
 0x3f7   :  { %v1309_v10 = vpop.f32.mrf.mxu0 }
 0x3f8   :  { %v983_v11 = vadd.f32 %v1492_v35, %v980_v9 }
 0x3fa   :  { %v984_v12 = vmax.f32 %v983_v11, 0.0 }
 0x3fc   :  { %1321 = vmatmul.mubr.msk.f32.vlgmr.msra.gmra.mxu1 %vm452_vm6, %v984_v12 }
 0x4bc   :  { %v1054_v13 = vpop.f32.mrf.mxu1 }
 0x4bd   :  { %v1055_v14 = vadd.f32 %v1524_v45, %v1054_v13 }
 0x4be   :  { %v1322_v15 = vpop.f32.mrf.mxu1 }
 0x4bf   :  { %v1058_v16 = vmax.f32 %v1055_v14, 0.0 }
 0x4c1   :  { %1334 = vmatmul.mubr.msk.f32.vlgmr.msra.gmra.mxu0 %vm452_vm6, %v1058_v16 }
 0x581   :  { %v1128_v0 = vpop.f32.mrf.mxu0 }
 0x582   :  { %v1129_v17 = vadd.f32 %v1156_v58, %v1128_v0 }
 0x583   :  { %v1335_v18 = vpop.f32.mrf.mxu0 }
 0x584   :  { %v1133_v19 = vrot.slane %v1129_v17, 6 }
 0x586   :  { %v1135_v20 = vadd.f32 %v1159_v56, %v1133_v19 }
 0x588   :  { %1171 = vst.msk [vmem:[%s1588_s3 + $0x6] sm:$0xfc] %vm608_vm7, %v1135_v20 }
 0x589   :  { %1142 = vsyncpa [#allocation3], 1 }

</bundles_post_ra>
